<compile_context>
chip_gen: v5e
topology: v5e:2x2
jax: 0.10.0
libtpu: 0.0.40
codegen_flags: <defaults>
</compile_context>

<pallas_src>
import functools
import math

import jax
import jax.numpy as jnp
from jax.experimental import pallas as pl
from jax.experimental.pallas import tpu as pltpu


def _qkv_attn_kernel(qkv_ref, o_ref, *, n_heads, attn_ch, scale_sq):
    # qkv_ref block: (1, n_ctx, width), width = n_heads * 3 * attn_ch
    # o_ref block:   (1, n_ctx, n_heads * attn_ch)
    x = qkv_ref[0]  # (T, width) in the input dtype (bf16 -> native MXU path)

    outs = []
    for h in range(n_heads):  # n_heads is a small compile-time constant
        base = h * 3 * attn_ch
        q = x[:, base:base + attn_ch]                     # (T, C)
        k = x[:, base + attn_ch:base + 2 * attn_ch]       # (S, C)
        v = x[:, base + 2 * attn_ch:base + 3 * attn_ch]   # (S, C)

        # Scores (T, S): contract the shared channel axis directly (no k.T /
        # XLU transpose), f32 accumulate on the MXU, then apply the folded
        # scale (scale*scale == 1/sqrt(attn_ch)) once in f32.
        w = jax.lax.dot_general(
            q, k,
            dimension_numbers=(((1,), (1,)), ((), ())),
            preferred_element_type=jnp.float32,
        ) * scale_sq

        # Softmax over keys in float32 (matches torch.softmax(weight.float(), -1)).
        w_max = jnp.max(w, axis=-1, keepdims=True)
        w_exp = jnp.exp(w - w_max)
        w_sum = jnp.sum(w_exp, axis=-1, keepdims=True)
        p = w_exp * pl.reciprocal(w_sum, approx=False)

        # Cast probabilities back to the input dtype (torch `.type(wdtype)`),
        # second matmul in the input dtype with f32 accumulation.
        out_h = jnp.dot(p.astype(x.dtype), v, preferred_element_type=jnp.float32)
        outs.append(out_h)

    # Single lane-dense store of the whole (T, n_heads*attn_ch) slab, already
    # in the PyTorch output layout (heads major, channels minor).
    o_ref[0] = jnp.concatenate(outs, axis=-1).astype(o_ref.dtype)


def qkv_multihead_attention(qkv: jax.Array, n_heads: int) -> jax.Array:
    """Pallas implementation of GLIDE QKVMultiheadAttention.forward."""
    bs, n_ctx, width = qkv.shape
    attn_ch = width // n_heads // 3
    width_out = n_heads * attn_ch
    scale = 1.0 / math.sqrt(math.sqrt(attn_ch))
    scale_sq = scale * scale  # == 1 / sqrt(attn_ch)

    kernel = functools.partial(
        _qkv_attn_kernel, n_heads=n_heads, attn_ch=attn_ch, scale_sq=scale_sq
    )

    # TODO(synk): for n_ctx >~ 2K the per-head (n_ctx, n_ctx) f32 score tile
    # should be flash-tiled over a KV grid axis (online softmax) to stay inside
    # v7x's 64 MiB VMEM; GLIDE contexts are small so the full tile is kept.
    return pl.pallas_call(
        kernel,
        out_shape=jax.ShapeDtypeStruct((bs, n_ctx, width_out), qkv.dtype),
        grid_spec=pltpu.PrefetchScalarGridSpec(
            num_scalar_prefetch=0,
            grid=(bs,),
            in_specs=[pl.BlockSpec((1, n_ctx, width), lambda b: (b, 0, 0))],
            out_specs=pl.BlockSpec((1, n_ctx, width_out), lambda b: (b, 0, 0)),
        ),
        compiler_params=pltpu.CompilerParams(
            dimension_semantics=("parallel",),
        ),
    )(qkv)


def qkv_multihead_attention_ref(qkv: jax.Array, n_heads: int) -> jax.Array:
    """Pure-JAX reference mirroring the PyTorch module line-for-line."""
    bs, n_ctx, width = qkv.shape
    attn_ch = width // n_heads // 3
    scale = 1.0 / math.sqrt(math.sqrt(attn_ch))
    qkv_r = qkv.reshape(bs, n_ctx, n_heads, -1)
    q = qkv_r[..., :attn_ch]
    k = qkv_r[..., attn_ch:2 * attn_ch]
    v = qkv_r[..., 2 * attn_ch:]
    weight = jnp.einsum("bthc,bshc->bhts", q * scale, k * scale)
    wdtype = weight.dtype
    weight = jax.nn.softmax(weight.astype(jnp.float32), axis=-1).astype(wdtype)
    out = jnp.einsum("bhts,bshc->bthc", weight, v)
    return out.reshape(bs, n_ctx, -1)


if __name__ == "__main__":
    # Module config (QKVMultiheadAttention has no learnable parameters).
    n_heads = 2
    n_ctx = 8
    attn_ch = 32
    bs = 2
    width = n_heads * 3 * attn_ch  # 192

    key = jax.random.PRNGKey(0)
    qkv = jax.random.normal(key, (bs, n_ctx, width), dtype=jnp.float32)

    out = qkv_multihead_attention(qkv, n_heads)
    out = jax.block_until_ready(out)

    ref = qkv_multihead_attention_ref(qkv, n_heads)
    assert out.shape == (bs, n_ctx, n_heads * attn_ch), out.shape
    assert jnp.allclose(out, ref, atol=2e-5, rtol=2e-5), (
        float(jnp.max(jnp.abs(out - ref)))
    )

    print("KERNEL_OK")
</pallas_src>

<mosaic_0001>
module attributes {stable_mosaic.version = 11 : i64} {
  func.func @_qkv_attn_kernel(%arg0: i32, %arg1: memref<1x8x192xf32, #tpu.memory_space<vmem>>, %arg2: memref<1x8x64xf32, #tpu.memory_space<vmem>>) attributes {dimension_semantics = [#tpu.dimension_semantics<parallel>], iteration_bounds = array<i64: 2>, scalar_prefetch = 0 : i64, scratch_operands = 0 : i64, tpu.core_type = #tpu.core_type<tc>, window_params = [{transform_indices = @transform_0, window_bounds = array<i64: 1, 8, 192>}, {transform_indices = @transform_1, window_bounds = array<i64: 1, 8, 64>}]} {
    %c0 = arith.constant 0 : index
    %c0_0 = arith.constant 0 : index
    %c0_1 = arith.constant 0 : index
    %0 = vector.load %arg1[%c0, %c0_0, %c0_1] : memref<1x8x192xf32, #tpu.memory_space<vmem>>, vector<1x8x192xf32>
    %1 = vector.shape_cast %0 : vector<1x8x192xf32> to vector<8x192xf32>
    %2 = vector.extract_strided_slice %1 {offsets = [0, 0], sizes = [8, 32], strides = [1, 1]} : vector<8x192xf32> to vector<8x32xf32>
    %3 = vector.extract_strided_slice %1 {offsets = [0, 32], sizes = [8, 32], strides = [1, 1]} : vector<8x192xf32> to vector<8x32xf32>
    %4 = vector.extract_strided_slice %1 {offsets = [0, 64], sizes = [8, 32], strides = [1, 1]} : vector<8x192xf32> to vector<8x32xf32>
    %cst = arith.constant dense<0.000000e+00> : vector<8x8xf32>
    %5 = tpu.matmul %2, %3, %cst {dimension_numbers = #tpu.dot_dimension_numbers<[1], [1], [0], [0], [0, 0, 1, 0], [], []>} : vector<8x32xf32>, vector<8x32xf32>, vector<8x8xf32> -> vector<8x8xf32>
    %cst_2 = arith.constant 0.176776692 : f32
    %6 = vector.broadcast %cst_2 : f32 to vector<8x8xf32>
    %7 = arith.mulf %5, %6 : vector<8x8xf32>
    %cst_3 = arith.constant dense<0xFF800000> : vector<8xf32>
    %8 = vector.multi_reduction <maximumf>, %7, %cst_3 [1] : vector<8x8xf32> to vector<8xf32>
    %9 = vector.shape_cast %8 : vector<8xf32> to vector<8x1xf32>
    %10 = vector.broadcast %9 : vector<8x1xf32> to vector<8x8xf32>
    %11 = arith.subf %7, %10 : vector<8x8xf32>
    %12 = math.exp %11 : vector<8x8xf32>
    %cst_4 = arith.constant dense<0.000000e+00> : vector<8xf32>
    %13 = vector.multi_reduction <add>, %12, %cst_4 [1] : vector<8x8xf32> to vector<8xf32>
    %14 = vector.shape_cast %13 : vector<8xf32> to vector<8x1xf32>
    %15 = tpu.reciprocal %14 : vector<8x1xf32> -> vector<8x1xf32>
    %16 = vector.broadcast %15 : vector<8x1xf32> to vector<8x8xf32>
    %17 = arith.mulf %12, %16 : vector<8x8xf32>
    %cst_5 = arith.constant dense<0.000000e+00> : vector<8x32xf32>
    %18 = tpu.matmul %17, %4, %cst_5 {dimension_numbers = #tpu.dot_dimension_numbers<[1], [0], [0], [1], [0, 0, 1, 1], [], []>} : vector<8x8xf32>, vector<8x32xf32>, vector<8x32xf32> -> vector<8x32xf32>
    %19 = vector.extract_strided_slice %1 {offsets = [0, 96], sizes = [8, 32], strides = [1, 1]} : vector<8x192xf32> to vector<8x32xf32>
    %20 = vector.extract_strided_slice %1 {offsets = [0, 128], sizes = [8, 32], strides = [1, 1]} : vector<8x192xf32> to vector<8x32xf32>
    %21 = vector.extract_strided_slice %1 {offsets = [0, 160], sizes = [8, 32], strides = [1, 1]} : vector<8x192xf32> to vector<8x32xf32>
    %cst_6 = arith.constant dense<0.000000e+00> : vector<8x8xf32>
    %22 = tpu.matmul %19, %20, %cst_6 {dimension_numbers = #tpu.dot_dimension_numbers<[1], [1], [0], [0], [0, 0, 1, 0], [], []>} : vector<8x32xf32>, vector<8x32xf32>, vector<8x8xf32> -> vector<8x8xf32>
    %cst_7 = arith.constant 0.176776692 : f32
    %23 = vector.broadcast %cst_7 : f32 to vector<8x8xf32>
    %24 = arith.mulf %22, %23 : vector<8x8xf32>
    %cst_8 = arith.constant dense<0xFF800000> : vector<8xf32>
    %25 = vector.multi_reduction <maximumf>, %24, %cst_8 [1] : vector<8x8xf32> to vector<8xf32>
    %26 = vector.shape_cast %25 : vector<8xf32> to vector<8x1xf32>
    %27 = vector.broadcast %26 : vector<8x1xf32> to vector<8x8xf32>
    %28 = arith.subf %24, %27 : vector<8x8xf32>
    %29 = math.exp %28 : vector<8x8xf32>
    %cst_9 = arith.constant dense<0.000000e+00> : vector<8xf32>
    %30 = vector.multi_reduction <add>, %29, %cst_9 [1] : vector<8x8xf32> to vector<8xf32>
    %31 = vector.shape_cast %30 : vector<8xf32> to vector<8x1xf32>
    %32 = tpu.reciprocal %31 : vector<8x1xf32> -> vector<8x1xf32>
    %33 = vector.broadcast %32 : vector<8x1xf32> to vector<8x8xf32>
    %34 = arith.mulf %29, %33 : vector<8x8xf32>
    %cst_10 = arith.constant dense<0.000000e+00> : vector<8x32xf32>
    %35 = tpu.matmul %34, %21, %cst_10 {dimension_numbers = #tpu.dot_dimension_numbers<[1], [0], [0], [1], [0, 0, 1, 1], [], []>} : vector<8x8xf32>, vector<8x32xf32>, vector<8x32xf32> -> vector<8x32xf32>
    %36 = tpu.concatenate %18, %35 in 1 : vector<8x32xf32>, vector<8x32xf32> -> vector<8x64xf32>
    %c0_11 = arith.constant 0 : index
    %c0_12 = arith.constant 0 : index
    %c0_13 = arith.constant 0 : index
    %37 = vector.load %arg2[%c0_11, %c0_12, %c0_13] : memref<1x8x64xf32, #tpu.memory_space<vmem>>, vector<1x8x64xf32>
    %38 = vector.shape_cast %37 : vector<1x8x64xf32> to vector<8x64xf32>
    %39 = vector.shape_cast %36 : vector<8x64xf32> to vector<1x8x64xf32>
    tpu.vector_store %arg2[%c0_11, %c0_12, %c0_13], %39 {strides = array<i32>} : memref<1x8x64xf32, #tpu.memory_space<vmem>>, vector<1x8x64xf32>,
    return
  }
  func.func @transform_0(%arg0: i32) -> (i32, i32, i32) {
    %c0_i32 = arith.constant 0 : i32
    %c0_i32_0 = arith.constant 0 : i32
    %c0_i32_1 = arith.constant 0 : i32
    return %arg0, %c0_i32, %c0_i32_0 : i32, i32, i32
  }
  func.func @transform_1(%arg0: i32) -> (i32, i32, i32) {
    %c0_i32 = arith.constant 0 : i32
    %c0_i32_0 = arith.constant 0 : i32
    %c0_i32_1 = arith.constant 0 : i32
    return %arg0, %c0_i32, %c0_i32_0 : i32, i32, i32
  }
}

</mosaic_0001>

<bundles_post_ra>
// kernel: tpu_custom_call.1
= control target key start
LH: loop header
LB: loop body
LE: loop exit
PB: predicated region body
PF: predicated region fallthrough
CT: control target
= control target key end

     0   :  { %6 = vsyncpa [#allocation3], 0  ;;  %s719_s0 = inlined_call_operand.hbm [shape: f32[2,8,192], index: 0, kind: input, shape index: {}]   ;;  %s720_s1 = inlined_call_operand.hbm [shape: f32[2,8,64], index: 1, kind: output, shape index: {}]  }
   0x1   :  { %8 = vsyncpa [#allocation3 + $0x1], 0 }
   0x2   :  { %9 = vsyncpa [#allocation4], 0 }
   0x3   :  { %11 = vsyncpa [#allocation4 + $0x1], 0  ;;  %s576_s6 = smov 0   ;;  %s578_s7 = smov 0  }
   0x4   :  { %s580_s8 = smov 0   ;;  %s582_s9 = smov 0  }
   0x5 LB: > { %s597_s10 = sadd.s32 4294967295, %s561_s9   ;;  %s388_s11 = sadd.s32 4294967294, %s561_s9   ;;  %s561_s9 = sphi %s582_s9, %s730_s9   ;;  %s557_s8 = sphi %s580_s8, %s729_s8   ;;  %s553_s7 = sphi %s578_s7, %s728_s7   ;;  %s549_s6 = sphi %s576_s6, %s727_s6  }
   0x6   : > { %s601_s12 = sadd.s32 1, %s561_s9   ;;  %s24_s13 = sadd.s32 1, %s557_s8 }
   0x7   : > { %s21_s14 = ssub.s32 %s561_s9, %s601_s12  ;;  %p31_p0 = scmp.ne.s32.totalorder %s557_s8, %s553_s7 }
   0x8   : > { %p22_p1 = scmp.eq.s32.totalorder %s21_s14, 0  ;;  %p32_p2 = scmp.eq.s32.totalorder %s561_s9, 0 }
   0x9   : > { %p37_p3 = scmp.ne.s32.totalorder %s553_s7, %s549_s6  ;;  %p38_p4 = scmp.eq.s32.totalorder %s597_s10, 0 }
   0xa   : > { %s613_s15 = scalar_select %p22_p1, %s557_s8, %s24_s13  }
   0xb   : > { %p615_p5 = por %p32_p2, %p31_p0  ;;  %p619_p6 = por %p38_p4, %p37_p3 }
   0xc   : > { %p61_p7 = scmp.eq.s32.totalorder %s597_s10, 1  ;;  %p67_p8 = scmp.eq.s32.totalorder %s388_s11, 1 }
   0xd   : > { %p420_p10 = scmp.lt.s32.totalorder %s561_s9, 2  ;;  %s87_s20 = sand.u32 1, %s557_s8  }
   0xe   : > { %p626_p11 = por %p61_p7, %p31_p0  ;;  %p630_p12 = por %p67_p8, %p37_p3 }
   0xf   : > { %s407_s21 = sshll.u32 %s561_s9, 4  ;;  %s391_s22 = sshll.u32 %s87_s20, 4 }
  0x10   : > { %s96_s25 = scalar_lea.hbm %s719_s0, %s407_s21  ;;  %s91_s27 = scalar_lea.vmem [#allocation2], %s391_s22 }
  0x11   : > { %s98_s26 = sshll.u32 %s96_s25, 4  ;;  %s100_s28 = sshll.u32 %s91_s27, 4  ;;  %s99_s26 = int_to_ptr.hbm [resolvable:$true] %s98_s26  ;;  %s101_s28 = int_to_ptr.vmem [resolvable:$true] %s100_s28 }
  0x12   : > { %p641_p13 = pnand %p420_p10, %p615_p5  ;;  %p394_p0 = scmp.ge.s32.totalorder %s561_s9, 1 }
  0x13   : > { %p105_p1 = scmp.lt.s32.totalorder %s561_s9, 3  ;;  %s88_s30 = scalar_lea.sflag [#allocation3], %s87_s20 }
  0x14   : > { %s465_s2 = sshra.s32 %s99_s26, 4  ;;  %p469_p3 = pneg %p641_p13  ;;  %s466_s2 = int_to_ptr.hbm [resolvable:$true] %s465_s2 }
  0x15   : > { %s467_s3 = scalar_lea.hbm %s466_s2, 16  ;;  %s472_s11 = scalar_lea.hbm %s719_s0, 32 }
  0x16   : > { %p468_p2 = scmp.ne.s32.totalorder %s466_s2, %s467_s3  ;;  %p473_p5 = scmp.lt.s32.totalorder %s466_s2, %s719_s0 }
  0x17   : > { %p474_p8 = scmp.lt.s32.totalorder %s472_s11, %s467_s3 }
  0x18   : > { %p470_p4 = pnand %p469_p3, %p468_p2 }
  0x19   : > { %p475_p10 = por %p474_p8, %p473_p5 }
  0x1a   : > { %p471_p7 = pneg %p470_p4 }
  0x1c   : > { %p476_p9 = pnand %p475_p10, %p471_p7 }
  0x1e   : > { %479 = shalt.err (!%p476_p9)
}
  0x1f   : > { %415 = dma.hbm_to_vmem [thread:$0]  (!%p641_p13), %s99_s26, 256, %s101_s28, %s88_s30  }
  0x20   : > { %p106_p2 = pnand %p394_p0, %p105_p1 }
  0x21   : > { %s662_s16 = sand.u32 (!%p106_p2), 1, %s553_s7  }
  0x22   : > { %109 = sbr.rel (%p106_p2) target bundleno = 781 (0x30d), region = 24  ;;  %s395_s20 = sshll.u32 (!%p106_p2), %s662_s16, 4 }
  0x23   : > { %s112_s21 = scalar_lea.sflag (!%p106_p2), [#allocation3], %s662_s16  ;;  %s115_s22 = scalar_lea.vmem (!%p106_p2), [#allocation2], %s395_s20 }
  0x27   : > { %540 = dma.done.wait (%p619_p6), %s112_s21, 256  }
  0x28   : > { %542 = vsyncadd (%p619_p6), %s112_s21, 4294967040  ;;  %vm140_vm0 = vcmask 261120   ;;  %v135_v0 = vld [vmem:[%s115_s22] sm:$0xff]  ;;  %v136_v1 = vld [vmem:[%s115_s22 + $0x8] sm:$0xff]  ;;  %s563_s23 = smov 32   ;;  %s564_s24 = smov 96  }
  0x29   : > { %217 = vrot.lane.b32.xlu0 %v135_v0, %s563_s23  ;;  %400 = vmatpush.xpose.msk.msra.mxu2 %vm140_vm0, %v136_v1  ;;  %vm166_vm1 = vcmask 64512   ;;  %s565_s17 = smov 64   ;;  %s396_s25 = sshll.u32 %s662_s16, 3  ;;  %vm300_vm10 = vcmask 523264  }
  0x2a   : > { %s404_s26 = sshll.u32 %s597_s10, 3  ;;  %s134_s30 = scalar_lea.vmem [#allocation5], %s396_s25 }
  0x2b   : > { %s313_s29 = scalar_lea.hbm %s720_s1, %s404_s26  ;;  %s315_s2 = sshll.u32 %s134_s30, 4  ;;  %s316_s2 = int_to_ptr.vmem [resolvable:$true] %s315_s2 }
  0x2c   : > { %s317_s3 = sshll.u32 %s313_s29, 4  ;;  %s303_s4 = scalar_lea.sflag [#allocation4], %s662_s16  ;;  %s318_s3 = int_to_ptr.hbm [resolvable:$true] %s317_s3 }
  0x2d   : > { %s509_s5 = sshra.s32 %s318_s3, 4  ;;  %s515_s14 = scalar_lea.hbm %s720_s1, 16  ;;  %s510_s5 = int_to_ptr.hbm [resolvable:$true] %s509_s5 }
  0x2e   : > { %s511_s10 = scalar_lea.hbm %s510_s5, 8  ;;  %p516_p0 = scmp.lt.s32.totalorder %s510_s5, %s720_s1 }
  0x2f   : > { %p512_p6 = scmp.ne.s32.totalorder %s510_s5, %s511_s10  ;;  %p517_p1 = scmp.lt.s32.totalorder %s515_s14, %s511_s10 }
  0x31   : > { %138 = vrot.lane.b32.xlu0 %v135_v0, %s564_s24  ;;  %p513_p9 = pnand %p512_p6, %p626_p11  ;;  %p518_p3 = por %p517_p1, %p516_p0 }
  0x33   : > { %p514_p13 = pneg %p513_p9 }
  0x35   : > { %p519_p4 = pnand %p518_p3, %p514_p13 }
  0x9b   : > { %v218_v2 = vpop.permute.xlu0 %217 }
  0x9c   : > { %401 = vmatmul.msk.f32.vlgmr.msra.gmra.mxu2 %vm140_vm0, %v218_v2 }
  0xa3   : > { %v139_v3 = vpop.permute.xlu0 %138 }
  0xa4   : > { %397 = vmatpush.xpose.msk.msra.mxu0 %vm140_vm0, %v139_v3 }
  0xa7   : > { %398 = vmatmul.msk.f32.vlgmr.msra.gmra.mxu0 %vm140_vm0, %v135_v0 }
 0x11f   : > { %v241_v4 = vpop.f32.mrf.mxu2 }
 0x120   : > { %v244_v5 = vmul.f32 0.17677669, %v241_v4 }
 0x122   : > { %v245_v6 = vsel %vm166_vm1, %v244_v5, -inf }
 0x123   : > { %246 = vmax.xlane.f32.xlu1 %v245_v6 }
 0x124   : > { %v162_v7 = vpop.f32.mrf.mxu0 }
 0x125   : > { %v165_v8 = vmul.f32 0.17677669, %v162_v7 }
 0x127   : > { %v167_v9 = vsel %vm166_vm1, %v165_v8, -inf }
 0x12b   : > { %168 = vmax.xlane.f32.xlu1 %v167_v9 }
 0x144   : > { %191 = vrot.lane.b32.xlu1 %v135_v0, %s565_s17 }
 0x196   : > { %v247_v10 = vpop.xlane.xlu1 %246 }
 0x197   : > { %v248_v11 = vsub.f32 %v244_v5, %v247_v10 }
 0x199   : > { %v249_v12 = vmul.f32 1.442695, %v248_v11 }
 0x19b   : > { %457 = vpow2.f32 %v249_v12 }
 0x19e   : > { %v169_v13 = vpop.xlane.xlu1 %168 }
 0x19f   : > { %v170_v14 = vsub.f32 %v165_v8, %v169_v13 }
 0x1a1   : > { %v458_v15 = vpop.eup %457  ;;  %v171_v16 = vmul.f32 1.442695, %v170_v14 }
 0x1a2   : > { %v251_v17 = vsel %vm166_vm1, %v458_v15, 0.0 }
 0x1a3   : > { %459 = vpow2.f32 %v171_v16  ;;  %252 = vadd.xlane.f32.xlu2 %v251_v17 }
 0x1a9   : > { %v460_v18 = vpop.eup %459 }
 0x1aa   : > { %v173_v19 = vsel %vm166_vm1, %v460_v18, 0.0 }
 0x1ab   : > { %174 = vadd.xlane.f32.xlu0 %v173_v19 }
 0x1b6   : > { %v192_v20 = vpop.permute.xlu1 %191 }
 0x1b7   : > { %212 = vmatpush.msra.mxu1 %v192_v20 }
 0x1bb   : > { %269 = vrot.lane.b32.xlu2 %v136_v1, %s564_s24 }
 0x216   : > { %v253_v21 = vpop.xlane.xlu2 %252 }
 0x217   : > { %461 = vrcp.f32 %v253_v21  ;;  %v265_v27 = vand.u32 2147483648, %v253_v21  ;;  %v263_v29 = vand.u32 2147483647, %v253_v21  ;;  %vm259_vm3 = vweird.f32 %v253_v21 }
 0x219   : > { %v266_v32 = vor.u32 1.1754944e-38, %v265_v27  ;;  %vm264_vm5 = vcmp.eq.f32.partialorder %v263_v29, 8.507059e+37 }
 0x21d   : > { %v462_v22 = vpop.eup %461 }
 0x21e   : > { %v255_v23 = vmul.f32 %v462_v22, %v253_v21  ;;  %v175_v24 = vpop.xlane.xlu0 %174  ;;  %v270_v25 = vpop.permute.xlu2 %269  ;;  %vm260_vm2 = vweird.f32 %v462_v22 }
 0x21f   : > { %463 = vrcp.f32 %v175_v24  ;;  %290 = vmatpush.msra.mxu3 %v270_v25  ;;  %vm261_vm4 = vmor %vm259_vm3, %vm260_vm2  ;;  %v187_v38 = vand.u32 2147483648, %v175_v24  ;;  %v185_v40 = vand.u32 2147483647, %v175_v24  ;;  %vm181_vm7 = vweird.f32 %v175_v24 }
 0x220   : > { %v256_v26 = vsub.f32 1.0, %v255_v23 }
 0x221   : > { %v188_v42 = vor.u32 1.1754944e-38, %v187_v38  ;;  %vm186_vm9 = vcmp.eq.f32.partialorder %v185_v40, 8.507059e+37 }
 0x222   : > { %v257_v28 = vmul.f32 %v462_v22, %v256_v26 }
 0x224   : > { %v258_v30 = vadd.f32 %v462_v22, %v257_v28 }
 0x225   : > { %v464_v31 = vpop.eup %463 }
 0x226   : > { %v177_v33 = vmul.f32 %v464_v31, %v175_v24  ;;  %v262_v34 = vsel %vm261_vm4, %v462_v22, %v258_v30  ;;  %vm182_vm6 = vweird.f32 %v464_v31 }
 0x227   : > { %v267_v35 = vsel %vm264_vm5, %v266_v32, %v262_v34  ;;  %vm183_vm8 = vmor %vm181_vm7, %vm182_vm6 }
 0x228   : > { %v178_v36 = vsub.f32 1.0, %v177_v33  ;;  %v268_v37 = vmul.f32 %v458_v15, %v267_v35 }
 0x22a   : > { %v179_v39 = vmul.f32 %v464_v31, %v178_v36  ;;  %402 = vmatmul.msk.f32.vlgmr.msra.gmra.mxu3 %vm166_vm1, %v268_v37 }
 0x22c   : > { %v180_v41 = vadd.f32 %v464_v31, %v179_v39 }
 0x22e   : > { %v184_v43 = vsel %vm183_vm8, %v464_v31, %v180_v41 }
 0x22f   : > { %v189_v44 = vsel %vm186_vm9, %v188_v42, %v184_v43 }
 0x230   : > { %v190_v45 = vmul.f32 %v460_v18, %v189_v44 }
 0x232   : > { %399 = vmatmul.msk.f32.vlgmr.msra.gmra.mxu1 %vm166_vm1, %v190_v45 }
 0x2ad   : > { %v292_v46 = vpop.f32.mrf.mxu3 }
 0x2ae   : > { %296 = vrot.lane.b32.xlu2 %v292_v46, %s563_s23 }
 0x2af   : > { %v214_v47 = vpop.f32.mrf.mxu1 }
 0x308   : > { %v297_v48 = vpop.permute.xlu2 %296 }
 0x309   : > { %v299_v49 = vsel %vm140_vm0, %v214_v47, %v297_v48 }
 0x30a   : > { %301 = vst.msk [vmem:[%s134_s30] sm:$0xff] %vm300_vm10, %v299_v49 }
 0x30b   : > { %522 = shalt.err (!%p519_p4)
}
 0x30c   : > { %410 = dma.vmem_to_hbm [thread:$0]  (%p626_p11), %s316_s2, 128, %s318_s3, %s303_s4  }
 0x30d PF: > { %s329_s16 = sand.u32 1, %s549_s6   ;;  %p726_p7 = scmp.ge.s32.totalorder %s561_s9, 2 }
 0x30e   : > { %s330_s22 = scalar_lea.sflag [#allocation4], %s329_s16 }
 0x30f   : > { %p417_p5 = pnand %p726_p7, %p630_p12 }
 0x311   : > { %p418_p8 = pneg %p417_p5 }
 0x313   : > { %544 = dma.done.wait (%p418_p8), %s330_s22, 128  }
 0x314   : > { %546 = vsyncadd (%p418_p8), %s330_s22, 4294967168  ;;  %p14_p10 = scmp.ge.s32.totalorder %s601_s12, 4   ;;  %s727_s6 = smov %s553_s7 }
 0x315   : > { %s728_s7 = smov %s557_s8  ;;  %s729_s8 = smov %s613_s15 }
 0x316   : > { %s730_s9 = smov %s601_s12  ;;  %16 = sbr.rel (!%p14_p10) target bundleno = 5 (0x5), region = 69 }
 0x31b   :  { %336 = vsyncpa [#allocation3], 1 }
 0x31c   :  { %338 = vsyncpa [#allocation3 + $0x1], 1 }
 0x31d   :  { %339 = vsyncpa [#allocation4], 1 }
 0x31e   :  { %341 = vsyncpa [#allocation4 + $0x1], 1 }

</bundles_post_ra>
